<compile_context>
chip_gen: v6e
topology: v6e:2x2x1
jax: 0.10.0
libtpu: 0.0.40
codegen_flags: <defaults>
</compile_context>

<pallas_src>
import functools

import jax
import jax.numpy as jnp
from jax.experimental import pallas as pl
from jax.experimental.pallas import tpu as pltpu


def _round_up(x: int, m: int) -> int:
    return ((x + m - 1) // m) * m


# ---------------------------------------------------------------------------
# Kernel: fused fc1 -> ReLU -> (dropout = identity in eval) -> fc2.
# ---------------------------------------------------------------------------
def mlp_kernel(x_ref, w1_ref, b1_ref, w2_ref, b2_ref, o_ref):
    xb = x_ref[...].astype(w1_ref.dtype)                       # in-kernel bf16 cast
    h = jnp.dot(xb, w1_ref[...], preferred_element_type=jnp.float32)
    h = jnp.maximum(h + b1_ref[...], 0.0)                      # bias + ReLU (f32)
    # dropout(p=0.7): identity in eval mode.
    out = jnp.dot(h.astype(w2_ref.dtype), w2_ref[...],
                  preferred_element_type=jnp.float32)
    o_ref[...] = (out + b2_ref[...]).astype(o_ref.dtype)


# ---------------------------------------------------------------------------
# One-time parameter preparation (NOT on the per-call path).
# Pads the hidden dim to a full 128-lane vreg (zero cols/rows contribute exactly
# 0 through ReLU) and casts MXU operands to bf16 (explicit precision choice).
# ---------------------------------------------------------------------------
def prepare_params(w1, b1, w2, b2, *, hidden_pad=128, compute_dtype=jnp.bfloat16):
    in_f, hidden = w1.shape
    out_f = w2.shape[1]
    hp = _round_up(hidden, hidden_pad) if hidden_pad else hidden
    w1p = jnp.zeros((in_f, hp), compute_dtype).at[:, :hidden].set(
        w1.astype(compute_dtype))
    b1p = jnp.zeros((1, hp), jnp.float32).at[:, :hidden].set(
        jnp.reshape(b1, (1, hidden)).astype(jnp.float32))
    w2p = jnp.zeros((hp, out_f), compute_dtype).at[:hidden, :].set(
        w2.astype(compute_dtype))
    b2p = jnp.reshape(b2, (1, out_f)).astype(jnp.float32)
    return w1p, b1p, w2p, b2p


def _weight_spec(shape):
    """Constant-index (VMEM-resident) block; single-buffered when supported."""
    idx = lambda i: (0, 0)
    try:
        return pl.BlockSpec(shape, idx, pipeline_mode=pl.Buffered(1))
    except (AttributeError, TypeError, ValueError):
        return pl.BlockSpec(shape, idx)


@functools.partial(jax.jit, static_argnames=("tile_b",))
def chatbot_forward_pallas(x, w1p, b1p, w2p, b2p, *, tile_b: int = 2048):
    """x: (B, in) f32; prepared params from prepare_params(); returns (B, out) f32."""
    B, in_f = x.shape
    hp = w1p.shape[1]
    out_f = w2p.shape[1]

    # Batch tile: single tile for small/medium batches; for large batches keep
    # >= 2 grid steps (tb <= ceil(B/2)) so the parallel axis can spread across
    # both v7x TensorCores.  Ragged last tile handled by the cdiv grid.
    if B <= 1024:
        tb = _round_up(B, 8)
    else:
        tb = min(tile_b, _round_up((B + 1) // 2, 8))
    grid = (pl.cdiv(B, tb),)

    cost = pl.CostEstimate(
        flops=2 * B * (in_f * hp + hp * out_f),
        transcendentals=0,
        bytes_accessed=(x.size * x.dtype.itemsize
                        + w1p.size * 2 + w2p.size * 2
                        + (b1p.size + b2p.size) * 4
                        + B * out_f * 4),
    )

    return pl.pallas_call(
        mlp_kernel,
        out_shape=jax.ShapeDtypeStruct((B, out_f), jnp.float32),
        grid=grid,
        in_specs=[
            pl.BlockSpec((tb, in_f), lambda i: (i, 0)),   # x: streamed over batch
            _weight_spec((in_f, hp)),                     # W1: VMEM-resident
            _weight_spec((1, hp)),                        # b1: VMEM-resident
            _weight_spec((hp, out_f)),                    # W2: VMEM-resident
            _weight_spec((1, out_f)),                     # b2: VMEM-resident
        ],
        out_specs=pl.BlockSpec((tb, out_f), lambda i: (i, 0)),
        compiler_params=pltpu.CompilerParams(
            dimension_semantics=("parallel",),            # shard batch steps across TCs
        ),
        cost_estimate=cost,
    )(x, w1p, b1p, w2p, b2p)


@jax.jit
def _xla_forward(x, w1p, b1p, w2p, b2p):
    h = jnp.maximum(x.astype(w1p.dtype) @ w1p + b1p, 0.0)
    return (h.astype(w2p.dtype) @ w2p + b2p).astype(jnp.float32)


def chatbot_forward(x, w1p, b1p, w2p, b2p, *, tile_b: int = 2048,
                    min_pallas_rows: int = 256):
    """Dispatcher: tiny batches are cheaper as one fused XLA op than a pallas_call."""
    if x.shape[0] < min_pallas_rows:
        return _xla_forward(x, w1p, b1p, w2p, b2p)
    return chatbot_forward_pallas(x, w1p, b1p, w2p, b2p, tile_b=tile_b)


def reference_forward(x, w1, b1, w2, b2):
    h = jnp.maximum(x @ w1 + jnp.reshape(b1, (1, -1)), 0.0)
    return h @ w2 + jnp.reshape(b2, (1, -1))


if __name__ == "__main__":
    # Shapes consistent with the module: input_size=32, hidden=64, output_size=16.
    input_size, hidden, output_size = 32, 64, 16

    key = jax.random.PRNGKey(0)
    k1, k2, k3, k4, kx1, kx2 = jax.random.split(key, 6)

    # Deterministic synthetic parameters (PyTorch-like uniform init scale).
    bound1 = 1.0 / (input_size ** 0.5)
    bound2 = 1.0 / (hidden ** 0.5)
    # nn.Linear stores weight as (out, in); here pre-transposed to (in, out).
    w1 = jax.random.uniform(k1, (input_size, hidden), jnp.float32, -bound1, bound1)
    b1 = jax.random.uniform(k2, (hidden,), jnp.float32, -bound1, bound1)
    w2 = jax.random.uniform(k3, (hidden, output_size), jnp.float32, -bound2, bound2)
    b2 = jax.random.uniform(k4, (output_size,), jnp.float32, -bound2, bound2)

    # One-time weight prep (cast + hidden pad), off the per-call path.
    w1p, b1p, w2p, b2p = jax.block_until_ready(prepare_params(w1, b1, w2, b2))

    # 1) Small batch through the Pallas kernel directly (single tile, grid=(1,)).
    x_small = jax.random.normal(kx1, (8, input_size), jnp.float32)
    out_small = jax.block_until_ready(
        chatbot_forward_pallas(x_small, w1p, b1p, w2p, b2p))
    ref_small = reference_forward(x_small, w1, b1, w2, b2)
    assert out_small.shape == (8, output_size)
    # bf16 MXU operands with f32 accumulation -> relaxed tolerance vs f32 reference.
    assert jnp.allclose(out_small, ref_small, atol=5e-2, rtol=5e-2), (
        float(jnp.max(jnp.abs(out_small - ref_small))))

    # 2) Ragged multi-step grid: B=2600, tile=1024 -> grid=(3,), partial last tile.
    x_big = jax.random.normal(kx2, (2600, input_size), jnp.float32)
    out_big = jax.block_until_ready(
        chatbot_forward_pallas(x_big, w1p, b1p, w2p, b2p, tile_b=1024))
    ref_big = reference_forward(x_big, w1, b1, w2, b2)
    assert out_big.shape == (2600, output_size)
    assert jnp.allclose(out_big, ref_big, atol=5e-2, rtol=5e-2), (
        float(jnp.max(jnp.abs(out_big - ref_big))))

    # 3) Dispatcher small-problem fast path (fused XLA, no pallas_call).
    out_fast = jax.block_until_ready(chatbot_forward(x_small, w1p, b1p, w2p, b2p))
    assert jnp.allclose(out_fast, ref_small, atol=5e-2, rtol=5e-2)

    print("KERNEL_OK")
</pallas_src>

<mosaic_0001>
module attributes {stable_mosaic.version = 11 : i64} {
  func.func @mlp_kernel(%arg0: i32, %arg1: memref<8x32xf32, #tpu.memory_space<vmem>>, %arg2: memref<32x128xbf16, #tpu.memory_space<vmem>>, %arg3: memref<1x128xf32, #tpu.memory_space<vmem>>, %arg4: memref<128x16xbf16, #tpu.memory_space<vmem>>, %arg5: memref<1x16xf32, #tpu.memory_space<vmem>>, %arg6: memref<8x16xf32, #tpu.memory_space<vmem>>) attributes {dimension_semantics = [#tpu.dimension_semantics<parallel>], iteration_bounds = array<i64: 1>, scalar_prefetch = 0 : i64, scratch_operands = 0 : i64, tpu.core_type = #tpu.core_type<tc>, window_params = [{transform_indices = @transform_0, window_bounds = array<i64: 8, 32>}, {pipeline_mode = #tpu.pipeline_mode<synchronous>, transform_indices = @transform_1, window_bounds = array<i64: 32, 128>}, {pipeline_mode = #tpu.pipeline_mode<synchronous>, transform_indices = @transform_2, window_bounds = array<i64: 1, 128>}, {pipeline_mode = #tpu.pipeline_mode<synchronous>, transform_indices = @transform_3, window_bounds = array<i64: 128, 16>}, {pipeline_mode = #tpu.pipeline_mode<synchronous>, transform_indices = @transform_4, window_bounds = array<i64: 1, 16>}, {transform_indices = @transform_5, window_bounds = array<i64: 8, 16>}]} {
    %c0 = arith.constant 0 : index
    %c0_0 = arith.constant 0 : index
    %0 = vector.load %arg1[%c0, %c0_0] : memref<8x32xf32, #tpu.memory_space<vmem>>, vector<8x32xf32>
    %1 = arith.truncf %0 : vector<8x32xf32> to vector<8x32xbf16>
    %c0_1 = arith.constant 0 : index
    %c0_2 = arith.constant 0 : index
    %2 = vector.load %arg2[%c0_1, %c0_2] : memref<32x128xbf16, #tpu.memory_space<vmem>>, vector<32x128xbf16>
    %cst = arith.constant dense<0.000000e+00> : vector<8x128xf32>
    %3 = tpu.matmul %1, %2, %cst {dimension_numbers = #tpu.dot_dimension_numbers<[1], [0], [0], [1], [0, 0, 1, 1], [], []>} : vector<8x32xbf16>, vector<32x128xbf16>, vector<8x128xf32> -> vector<8x128xf32>
    %c0_3 = arith.constant 0 : index
    %c0_4 = arith.constant 0 : index
    %4 = vector.load %arg3[%c0_3, %c0_4] : memref<1x128xf32, #tpu.memory_space<vmem>>, vector<1x128xf32>
    %5 = vector.broadcast %4 : vector<1x128xf32> to vector<8x128xf32>
    %6 = arith.addf %3, %5 : vector<8x128xf32>
    %cst_5 = arith.constant 0.000000e+00 : f32
    %7 = vector.broadcast %cst_5 : f32 to vector<8x128xf32>
    %8 = arith.maximumf %6, %7 : vector<8x128xf32>
    %9 = arith.truncf %8 : vector<8x128xf32> to vector<8x128xbf16>
    %c0_6 = arith.constant 0 : index
    %c0_7 = arith.constant 0 : index
    %10 = vector.load %arg4[%c0_6, %c0_7] : memref<128x16xbf16, #tpu.memory_space<vmem>>, vector<128x16xbf16>
    %cst_8 = arith.constant dense<0.000000e+00> : vector<8x16xf32>
    %11 = tpu.matmul %9, %10, %cst_8 {dimension_numbers = #tpu.dot_dimension_numbers<[1], [0], [0], [1], [0, 0, 1, 1], [], []>} : vector<8x128xbf16>, vector<128x16xbf16>, vector<8x16xf32> -> vector<8x16xf32>
    %c0_9 = arith.constant 0 : index
    %c0_10 = arith.constant 0 : index
    %12 = vector.load %arg5[%c0_9, %c0_10] : memref<1x16xf32, #tpu.memory_space<vmem>>, vector<1x16xf32>
    %13 = vector.broadcast %12 : vector<1x16xf32> to vector<8x16xf32>
    %14 = arith.addf %11, %13 : vector<8x16xf32>
    %c0_11 = arith.constant 0 : index
    %c0_12 = arith.constant 0 : index
    %15 = vector.load %arg6[%c0_11, %c0_12] : memref<8x16xf32, #tpu.memory_space<vmem>>, vector<8x16xf32>
    tpu.vector_store %arg6[%c0_11, %c0_12], %14 {strides = array<i32>} : memref<8x16xf32, #tpu.memory_space<vmem>>, vector<8x16xf32>,
    return
  }
  func.func @transform_0(%arg0: i32) -> (i32, i32) {
    %c0_i32 = arith.constant 0 : i32
    %c0_i32_0 = arith.constant 0 : i32
    return %arg0, %c0_i32 : i32, i32
  }
  func.func @transform_1(%arg0: i32) -> (i32, i32) {
    %c0_i32 = arith.constant 0 : i32
    %c0_i32_0 = arith.constant 0 : i32
    %c0_i32_1 = arith.constant 0 : i32
    return %c0_i32, %c0_i32_0 : i32, i32
  }
  func.func @transform_2(%arg0: i32) -> (i32, i32) {
    %c0_i32 = arith.constant 0 : i32
    %c0_i32_0 = arith.constant 0 : i32
    %c0_i32_1 = arith.constant 0 : i32
    return %c0_i32, %c0_i32_0 : i32, i32
  }
  func.func @transform_3(%arg0: i32) -> (i32, i32) {
    %c0_i32 = arith.constant 0 : i32
    %c0_i32_0 = arith.constant 0 : i32
    %c0_i32_1 = arith.constant 0 : i32
    return %c0_i32, %c0_i32_0 : i32, i32
  }
  func.func @transform_4(%arg0: i32) -> (i32, i32) {
    %c0_i32 = arith.constant 0 : i32
    %c0_i32_0 = arith.constant 0 : i32
    %c0_i32_1 = arith.constant 0 : i32
    return %c0_i32, %c0_i32_0 : i32, i32
  }
  func.func @transform_5(%arg0: i32) -> (i32, i32) {
    %c0_i32 = arith.constant 0 : i32
    %c0_i32_0 = arith.constant 0 : i32
    return %arg0, %c0_i32 : i32, i32
  }
}

</mosaic_0001>

<bundles_post_ra>
// kernel: chatbot_forward_pallas.1
= control target key start
LH: loop header
LB: loop body
LE: loop exit
PB: predicated region body
PF: predicated region fallthrough
CT: control target
= control target key end

     0   :  { %v308_v1 = vmov 0.0   ;;  %vm309_vm0 = vmmov 0   ;;  %vm47_vm1 = vcmask 261120   ;;  %s383_s0 = inlined_call_operand.vmem [shape: f32[8,32], index: 0, kind: input, shape index: {}]   ;;  %s384_s1 = inlined_call_operand.vmem [shape: bf16[32,128], index: 1, kind: input, shape index: {}]   ;;  %s385_s2 = inlined_call_operand.vmem [shape: f32[1,128], index: 2, kind: input, shape index: {}]   ;;  %s386_s3 = inlined_call_operand.vmem [shape: bf16[128,16], index: 3, kind: input, shape index: {}]   ;;  %s387_s4 = inlined_call_operand.vmem [shape: f32[1,16], index: 4, kind: input, shape index: {}]   ;;  %s388_s5 = inlined_call_operand.hbm [shape: f32[8,16], index: 5, kind: output, shape index: {}]  }
   0x1   :  { %v276_v0 = vld [vmem:[%s384_s1 + $0x8] sm:$0xff]   ;;  %245 = vmatprep.subr.bf16.mxu0 %v308_v1  ;;  %v277_v2 = vld [vmem:[%s384_s1] sm:$0xff]   ;;  %253 = vmatprep.subr.bf16.mxu1 %v308_v1  ;;  %v278_v4 = vld [vmem:[%s386_s3 + $0x38] sm:$0xff]  }
   0x2   :  { %246 = vmatpush3.bf16.msra.mxu0 %v276_v0  ;;  %249 = vmatprep.mubr.msk.bf16.mxu0 %vm309_vm0, %v308_v1  ;;  %v22_v3 = vld [vmem:[%s383_s0] sm:$0xff]  ;;  %v279_v6 = vld [vmem:[%s386_s3 + $0x30] sm:$0xff]   ;;  %v280_v7 = vld [vmem:[%s386_s3 + $0x28] sm:$0xff]  }
   0x3   :  { %247 = vmatprep.subr.bf16.mxu0 %v308_v1  ;;  %269 = vmatprep.mubr.msk.bf16.mxu1 %vm309_vm0, %v308_v1  ;;  %v23_v5 = vpack.c.bf16 %v22_v3, %v22_v3 }
   0x4   :  { %254 = vmatpush3.bf16.msra.mxu1 %v278_v4 }
   0x5   :  { %255 = vmatprep.subr.bf16.mxu1 %v308_v1 }
   0x6   :  { %248 = vmatpush3.bf16.msra.mxu0 %v277_v2 }
   0x8   :  { %256 = vmatpush3.bf16.msra.mxu1 %v279_v6 }
   0x9   :  { %250 = vmatmul.mubr.msk.bf16.vlgmr.msra.gmra.mxu0 %vm47_vm1, %v23_v5  ;;  %257 = vmatprep.subr.bf16.mxu1 %v308_v1 }
   0xa   :  { %10 = vsyncpa [#allocation3], 0  ;;  %v281_v8 = vld [vmem:[%s386_s3 + $0x20] sm:$0xff]   ;;  %v282_v9 = vld [vmem:[%s386_s3 + $0x18] sm:$0xff]   ;;  %s310_s17 = smov [#allocation2]   ;;  %vm204_vm2 = vcmask 130048  }
   0xb   :  { %v283_v10 = vld [vmem:[%s386_s3 + $0x10] sm:$0xff]   ;;  %v284_v11 = vld [vmem:[%s386_s3 + $0x8] sm:$0xff]   ;;  %v285_v12 = vld [vmem:[%s386_s3] sm:$0xff]   ;;  %s212_s18 = sshll.u32 %s310_s17, 4  ;;  %s213_s18 = int_to_ptr.vmem [resolvable:$true] %s212_s18 }
   0xc   :  { %258 = vmatpush3.bf16.msra.mxu1 %v280_v7  ;;  %v220_v13 = vld [vmem:[%s385_s2] ss:$0 sm:$0xff]  ;;  %s286_s2 = scalar_lea.vmem %s213_s18, 128  ;;  %p291_p1 = scmp.lt.s32.totalorder %s213_s18, %s213_s18 }
   0xd   :  { %259 = vmatprep.subr.bf16.mxu1 %v308_v1  ;;  %v224_v21 = vld [vmem:[%s387_s4] ss:$0 sm:$0xff]  ;;  %p287_p0 = scmp.ne.s32.totalorder %s213_s18, %s286_s2  ;;  %p292_p2 = scmp.lt.s32.totalorder %s286_s2, %s286_s2 }
   0xf   :  { %p293_p3 = por %p292_p2, %p291_p1 }
  0x10   :  { %260 = vmatpush3.bf16.msra.mxu1 %v281_v8 }
  0x11   :  { %261 = vmatprep.subr.bf16.mxu1 %v308_v1  ;;  %p294_p4 = pnand %p293_p3, %p287_p0 }
  0x14   :  { %262 = vmatpush3.bf16.msra.mxu1 %v282_v9 }
  0x15   :  { %263 = vmatprep.subr.bf16.mxu1 %v308_v1 }
  0x18   :  { %264 = vmatpush3.bf16.msra.mxu1 %v283_v10 }
  0x19   :  { %265 = vmatprep.subr.bf16.mxu1 %v308_v1 }
  0x1c   :  { %266 = vmatpush3.bf16.msra.mxu1 %v284_v11 }
  0x1d   :  { %267 = vmatprep.subr.bf16.mxu1 %v308_v1 }
  0x20   :  { %268 = vmatpush3.bf16.msra.mxu1 %v285_v12 }
  0xc9   :  { %v85_v14 = vpop.f32.mrf.mxu0 }
  0xca   :  { %v86_v15 = vadd.f32 %v220_v13, %v85_v14 }
  0xcb   :  { %v251_v16 = vpop.f32.mrf.mxu0 }
  0xcc   :  { %v91_v17 = vmax.f32 %v86_v15, 0.0 }
  0xcd   :  { %v88_v18 = vpop.f32.mrf.mxu0 }
  0xce   :  { %v92_v19 = vpack.c.bf16 %v91_v17, %v91_v17 }
  0xcf   :  { %v252_v20 = vpop.f32.mrf.mxu0 }
  0xd0   :  { %270 = vmatmul.mubr.bf16.vlgmr.msra.gmra.mxu1 %v92_v19 }
 0x190   :  { %v198_v22 = vpop.f32.mrf.mxu1 }
 0x191   :  { %v199_v23 = vadd.f32 %v224_v21, %v198_v22 }
 0x192   :  { %v271_v24 = vpop.f32.mrf.mxu1 }
 0x193   :  { %205 = vst.msk [vmem:[#allocation2] sm:$0xff] %vm204_vm2, %v199_v23 }
 0x194   :  { %v201_v25 = vpop.f32.mrf.mxu1 }
 0x195   :  { %297 = shalt.err (!%p294_p4)
}
 0x196   :  { %215 = dma.vmem_to_hbm [thread:$0]  %s213_s18, 128, %s388_s5, [#allocation3]   ;;  %v272_v26 = vpop.f32.mrf.mxu1 }
 0x197   :  { %306 = dma.done.wait [#allocation3], 128  }
 0x198   :  { %307 = vsyncadd [#allocation3], 4294967168 }
 0x199   :  { %219 = vsyncpa [#allocation3], 1 }

</bundles_post_ra>
